<compile_context>
chip_gen: v7x
topology: tpu7x:2x2x1
jax: 0.10.0
libtpu: 0.0.40
codegen_flags: <defaults>
</compile_context>

<pallas_src>
import jax
import jax.numpy as jnp
from jax.experimental import pallas as pl
from jax.experimental.pallas import tpu as pltpu


def _round_up(x, m):
    return ((x + m - 1) // m) * m


def _chip_hint():
    """Per-generation tuning: (min parallel grid steps, default row tile).

    v7x: 2 TensorCores/chip + ~3.2 TB/s HBM -> want >= 2 'parallel' grid steps
    and larger tiles to amortize the ~0.35us/step pipeline overhead.
    v5e/v6e: single TC; 8192-row tiles already sit near the HBM roofline.
    """
    try:
        kind = jax.devices()[0].device_kind.lower()
    except Exception:
        kind = ""
    if "v7" in kind:
        return 2, 16384
    return 1, 8192


def _decoder_kernel(zsrc_ref, zdst_ref, w1a_ref, w1b_ref, b1_ref, w2_ref,
                    b2_ref, out_ref):
    # lin1 on concat([z_src, z_dst]) folded into two matmuls (MXU, f32 accum).
    h = (jnp.dot(zsrc_ref[...], w1a_ref[...], preferred_element_type=jnp.float32)
         + jnp.dot(zdst_ref[...], w1b_ref[...], preferred_element_type=jnp.float32)
         + b1_ref[...])
    # ReLU (VPU).
    h = jnp.maximum(h, 0.0)
    # TODO(synk): dropout(p=0.2) is identity in eval mode; training-mode dropout
    # would use pltpu.prng_seed + pltpu.prng_random_bits.
    # lin2: (1,H) contracted against (tm,H) over H -> (1, tm) lane-dense logits
    # row (same contraction pattern as q.k^T; avoids a (tm,1) column store).
    logits = jax.lax.dot_general(
        w2_ref[...], h, (((1,), (1,)), ((), ())),
        preferred_element_type=jnp.float32)
    logits = logits + b2_ref[0]                 # scalar bias from SMEM
    out_ref[...] = jax.nn.sigmoid(logits).astype(out_ref.dtype)


def prepare_params(w1, b1, w2, b2, compute_dtype=jnp.float32):
    """One-time parameter prep (hoisted out of the per-call hot path).

    w1: (H, 2H) PyTorch lin1 weight, b1: (H,), w2: (1, H), b2: (1,).
    compute_dtype: dtype the activations will be streamed in (f32 or bf16).
    """
    H = w1.shape[0]
    assert w1.shape == (H, 2 * H) and b1.shape == (H,)
    assert w2.shape == (1, H) and b2.shape == (1,)
    w1a = jnp.transpose(w1[:, :H]).astype(compute_dtype)   # (H, H) src half of lin1
    w1b = jnp.transpose(w1[:, H:]).astype(compute_dtype)   # (H, H) dst half of lin1
    b1r = b1.reshape(1, H).astype(jnp.float32)              # broadcast row (f32)
    w2r = w2.astype(jnp.float32)                             # (1, H) lin2 row (f32)
    b2s = b2.astype(jnp.float32)                             # (1,) scalar -> SMEM
    return w1a, w1b, b1r, w2r, b2s


def graphsage_decoder(z_src, z_dst, params, *, tm=None, vmem_budget=40 << 20):
    """z_src, z_dst: (N, H) activations (f32 or bf16). params: prepare_params(...).

    Returns sigmoid link scores of shape (N, 1), float32.
    """
    w1a, w1b, b1r, w2r, b2s = params
    N, H = z_src.shape
    assert z_dst.shape == (N, H)
    assert w1a.shape == (H, H) and w1b.shape == (H, H)

    cdt = z_src.dtype
    # Weights stream at the activation dtype for the MXU (no-op if already matched).
    w1a = w1a.astype(cdt)
    w1b = w1b.astype(cdt)

    min_steps, tm_default = _chip_hint()
    if tm is None:
        tm = tm_default

    # --- Tile sizing against the lane-padded VMEM footprint -----------------
    # A (tm, H) block occupies lanes as if H were padded to 128, so budget with
    # H_pad, not H.  Double-buffered: 2 streams x 2 buffers.
    H_pad = _round_up(max(H, 128), 128)
    itemsize = jnp.dtype(cdt).itemsize
    per_row_bytes = 2 * 2 * H_pad * itemsize + 2 * 8 * 4   # activations + out row
    tm_cap = max(128, (vmem_budget // per_row_bytes) // 128 * 128)
    tm_req = _round_up(max(128, min(tm, tm_cap)), 128)

    # 128-aligned tile; on v7x cap it so the grid has >= min_steps parallel steps.
    tm_eff = min(_round_up(pl.cdiv(N, min_steps), 128), tm_req)
    tm_eff = max(tm_eff, 128)

    grid_steps = pl.cdiv(N, tm_eff)
    n_pad = grid_steps * tm_eff            # padded output width only (tiny, N floats)

    # Explicit VMEM limit: above v5e's 16 MiB scoped default, under v7x's
    # 64 MiB physical VMEM (with headroom).
    act_bytes = 2 * 2 * tm_eff * H_pad * itemsize
    out_bytes = 2 * 8 * tm_eff * 4
    wgt_bytes = 2 * (2 * _round_up(H, 8) * H_pad * itemsize + 2 * 8 * H_pad * 4)
    vmem_limit = int(min(act_bytes + out_bytes + wgt_bytes + (4 << 20), 48 << 20))

    # NOTE: the resident W1a/W1b blocks are double-buffered by default; at
    # H=32 that is negligible.  If H is ever scaled >= 512, single-buffer them
    # (pipeline_mode=pl.Buffered(1)) or DMA once into scratch.
    out_row = pl.pallas_call(
        _decoder_kernel,
        out_shape=jax.ShapeDtypeStruct((1, n_pad), jnp.float32),
        grid_spec=pltpu.PrefetchScalarGridSpec(
            num_scalar_prefetch=0,
            grid=(grid_steps,),
            in_specs=[
                pl.BlockSpec((tm_eff, H), lambda i: (i, 0)),   # z_src tile
                pl.BlockSpec((tm_eff, H), lambda i: (i, 0)),   # z_dst tile
                pl.BlockSpec((H, H), lambda i: (0, 0)),        # W1 src half (resident)
                pl.BlockSpec((H, H), lambda i: (0, 0)),        # W1 dst half (resident)
                pl.BlockSpec((1, H), lambda i: (0, 0)),        # b1 row
                pl.BlockSpec((1, H), lambda i: (0, 0)),        # W2 row
                pl.BlockSpec(memory_space=pltpu.MemorySpace.SMEM),  # b2 scalar
            ],
            out_specs=pl.BlockSpec((1, tm_eff), lambda i: (0, i)),  # lane-dense row
        ),
        compiler_params=pltpu.CompilerParams(
            dimension_semantics=("parallel",),
            vmem_limit_bytes=vmem_limit),
    )(z_src, z_dst, w1a, w1b, b1r, w2r, b2s)

    # (1, n_pad) row -> (N, 1) column.  Lanes >= N may hold garbage from the
    # partial edge block; they MUST be dropped here (and only here).
    return out_row.reshape(n_pad, 1)[:N]


def _reference(z_src, z_dst, w1, b1, w2, b2):
    z = jnp.concatenate([z_src, z_dst], axis=-1)
    z = jnp.maximum(z @ w1.T + b1, 0.0)
    z = z @ w2.T + b2
    return jax.nn.sigmoid(z)


if __name__ == "__main__":
    H = 32        # hidden_channels

    key = jax.random.PRNGKey(0)
    k1, k2, k3, k4, k5, k6 = jax.random.split(key, 6)

    # Deterministic parameter init (PyTorch Linear: U(-1/sqrt(fan_in), 1/sqrt(fan_in))).
    bnd1 = 1.0 / jnp.sqrt(2.0 * H)
    w1 = jax.random.uniform(k3, (H, 2 * H), jnp.float32, -bnd1, bnd1)
    b1 = jax.random.uniform(k4, (H,), jnp.float32, -bnd1, bnd1)
    bnd2 = 1.0 / jnp.sqrt(1.0 * H)
    w2 = jax.random.uniform(k5, (1, H), jnp.float32, -bnd2, bnd2)
    b2 = jax.random.uniform(k6, (1,), jnp.float32, -bnd2, bnd2)

    # One-time parameter prep (hoisted out of the per-call hot path).
    params_f32 = prepare_params(w1, b1, w2, b2, jnp.float32)
    params_bf16 = prepare_params(w1, b1, w2, b2, jnp.bfloat16)

    # Case 1: aligned N, single tile.
    N = 128
    z_src = jax.random.normal(k1, (N, H), dtype=jnp.float32)
    z_dst = jax.random.normal(k2, (N, H), dtype=jnp.float32)
    out = jax.block_until_ready(graphsage_decoder(z_src, z_dst, params_f32))
    ref = _reference(z_src, z_dst, w1, b1, w2, b2)
    assert out.shape == (N, 1)
    assert jnp.allclose(out, ref, atol=1e-5, rtol=1e-5)

    # Case 2: misaligned N -> partial edge block, no input padding.
    out2 = jax.block_until_ready(graphsage_decoder(z_src[:100], z_dst[:100], params_f32))
    ref2 = _reference(z_src[:100], z_dst[:100], w1, b1, w2, b2)
    assert out2.shape == (100, 1)
    assert jnp.allclose(out2, ref2, atol=1e-5, rtol=1e-5)

    # Case 3: multi-step grid (force a small tile) with a misaligned N.
    N3 = 600
    z3s = jax.random.normal(k1, (N3, H), dtype=jnp.float32)
    z3d = jax.random.normal(k2, (N3, H), dtype=jnp.float32)
    out3 = jax.block_until_ready(graphsage_decoder(z3s, z3d, params_f32, tm=256))
    ref3 = _reference(z3s, z3d, w1, b1, w2, b2)
    assert out3.shape == (N3, 1)
    assert jnp.allclose(out3, ref3, atol=1e-5, rtol=1e-5)

    # Case 4: bf16 activation streaming (halves HBM bytes; f32 accumulation).
    out4 = jax.block_until_ready(
        graphsage_decoder(z3s.astype(jnp.bfloat16), z3d.astype(jnp.bfloat16),
                          params_bf16))
    assert out4.shape == (N3, 1)
    assert jnp.allclose(out4, ref3, atol=3e-2)

    print("KERNEL_OK")
</pallas_src>

<mosaic_0001>
module attributes {stable_mosaic.version = 11 : i64} {
  func.func @_decoder_kernel(%arg0: i32, %arg1: memref<128x32xf32, #tpu.memory_space<vmem>>, %arg2: memref<128x32xf32, #tpu.memory_space<vmem>>, %arg3: memref<32x32xf32, #tpu.memory_space<vmem>>, %arg4: memref<32x32xf32, #tpu.memory_space<vmem>>, %arg5: memref<1x32xf32, #tpu.memory_space<vmem>>, %arg6: memref<1x32xf32, #tpu.memory_space<vmem>>, %arg7: memref<1xf32, #tpu.memory_space<smem>>, %arg8: memref<1x128xf32, #tpu.memory_space<vmem>>) attributes {dimension_semantics = [#tpu.dimension_semantics<parallel>], iteration_bounds = array<i64: 1>, scalar_prefetch = 0 : i64, scratch_operands = 0 : i64, tpu.core_type = #tpu.core_type<tc>, window_params = [{transform_indices = @transform_0, window_bounds = array<i64: 128, 32>}, {transform_indices = @transform_1, window_bounds = array<i64: 128, 32>}, {pipeline_mode = #tpu.pipeline_mode<synchronous>, transform_indices = @transform_2, window_bounds = array<i64: 32, 32>}, {pipeline_mode = #tpu.pipeline_mode<synchronous>, transform_indices = @transform_3, window_bounds = array<i64: 32, 32>}, {pipeline_mode = #tpu.pipeline_mode<synchronous>, transform_indices = @transform_4, window_bounds = array<i64: 1, 32>}, {pipeline_mode = #tpu.pipeline_mode<synchronous>, transform_indices = @transform_5, window_bounds = array<i64: 1, 32>}, {transform_indices = @transform_6, window_bounds = array<i64: 1>}, {transform_indices = @transform_7, window_bounds = array<i64: 1, 128>}]} {
    %c0 = arith.constant 0 : index
    %c0_0 = arith.constant 0 : index
    %0 = vector.load %arg1[%c0, %c0_0] : memref<128x32xf32, #tpu.memory_space<vmem>>, vector<128x32xf32>
    %c0_1 = arith.constant 0 : index
    %c0_2 = arith.constant 0 : index
    %1 = vector.load %arg3[%c0_1, %c0_2] : memref<32x32xf32, #tpu.memory_space<vmem>>, vector<32x32xf32>
    %cst = arith.constant dense<0.000000e+00> : vector<128x32xf32>
    %2 = tpu.matmul %0, %1, %cst {dimension_numbers = #tpu.dot_dimension_numbers<[1], [0], [0], [1], [0, 0, 1, 1], [], []>} : vector<128x32xf32>, vector<32x32xf32>, vector<128x32xf32> -> vector<128x32xf32>
    %c0_3 = arith.constant 0 : index
    %c0_4 = arith.constant 0 : index
    %3 = vector.load %arg2[%c0_3, %c0_4] : memref<128x32xf32, #tpu.memory_space<vmem>>, vector<128x32xf32>
    %c0_5 = arith.constant 0 : index
    %c0_6 = arith.constant 0 : index
    %4 = vector.load %arg4[%c0_5, %c0_6] : memref<32x32xf32, #tpu.memory_space<vmem>>, vector<32x32xf32>
    %cst_7 = arith.constant dense<0.000000e+00> : vector<128x32xf32>
    %5 = tpu.matmul %3, %4, %cst_7 {dimension_numbers = #tpu.dot_dimension_numbers<[1], [0], [0], [1], [0, 0, 1, 1], [], []>} : vector<128x32xf32>, vector<32x32xf32>, vector<128x32xf32> -> vector<128x32xf32>
    %6 = arith.addf %2, %5 : vector<128x32xf32>
    %c0_8 = arith.constant 0 : index
    %c0_9 = arith.constant 0 : index
    %7 = vector.load %arg5[%c0_8, %c0_9] : memref<1x32xf32, #tpu.memory_space<vmem>>, vector<1x32xf32>
    %8 = vector.broadcast %7 : vector<1x32xf32> to vector<128x32xf32>
    %9 = arith.addf %6, %8 : vector<128x32xf32>
    %cst_10 = arith.constant 0.000000e+00 : f32
    %10 = vector.broadcast %cst_10 : f32 to vector<128x32xf32>
    %11 = arith.maximumf %9, %10 : vector<128x32xf32>
    %c0_11 = arith.constant 0 : index
    %c0_12 = arith.constant 0 : index
    %12 = vector.load %arg6[%c0_11, %c0_12] : memref<1x32xf32, #tpu.memory_space<vmem>>, vector<1x32xf32>
    %cst_13 = arith.constant dense<0.000000e+00> : vector<1x128xf32>
    %13 = tpu.matmul %12, %11, %cst_13 {dimension_numbers = #tpu.dot_dimension_numbers<[1], [1], [0], [0], [0, 0, 1, 0], [], []>} : vector<1x32xf32>, vector<128x32xf32>, vector<1x128xf32> -> vector<1x128xf32>
    %c0_14 = arith.constant 0 : index
    %14 = memref.load %arg7[%c0_14] : memref<1xf32, #tpu.memory_space<smem>>
    %15 = vector.broadcast %14 : f32 to vector<1x128xf32>
    %16 = arith.addf %13, %15 : vector<1x128xf32>
    %17 = arith.negf %16 : vector<1x128xf32>
    %18 = math.exp %17 : vector<1x128xf32>
    %cst_15 = arith.constant 1.000000e+00 : f32
    %19 = vector.broadcast %cst_15 : f32 to vector<1x128xf32>
    %20 = arith.addf %19, %18 : vector<1x128xf32>
    %21 = arith.divf %19, %20 : vector<1x128xf32>
    %c0_16 = arith.constant 0 : index
    %c0_17 = arith.constant 0 : index
    %22 = vector.load %arg8[%c0_16, %c0_17] : memref<1x128xf32, #tpu.memory_space<vmem>>, vector<1x128xf32>
    tpu.vector_store %arg8[%c0_16, %c0_17], %21 {strides = array<i32>} : memref<1x128xf32, #tpu.memory_space<vmem>>, vector<1x128xf32>,
    return
  }
  func.func @transform_0(%arg0: i32) -> (i32, i32) {
    %c0_i32 = arith.constant 0 : i32
    %c0_i32_0 = arith.constant 0 : i32
    return %arg0, %c0_i32 : i32, i32
  }
  func.func @transform_1(%arg0: i32) -> (i32, i32) {
    %c0_i32 = arith.constant 0 : i32
    %c0_i32_0 = arith.constant 0 : i32
    return %arg0, %c0_i32 : i32, i32
  }
  func.func @transform_2(%arg0: i32) -> (i32, i32) {
    %c0_i32 = arith.constant 0 : i32
    %c0_i32_0 = arith.constant 0 : i32
    %c0_i32_1 = arith.constant 0 : i32
    return %c0_i32, %c0_i32_0 : i32, i32
  }
  func.func @transform_3(%arg0: i32) -> (i32, i32) {
    %c0_i32 = arith.constant 0 : i32
    %c0_i32_0 = arith.constant 0 : i32
    %c0_i32_1 = arith.constant 0 : i32
    return %c0_i32, %c0_i32_0 : i32, i32
  }
  func.func @transform_4(%arg0: i32) -> (i32, i32) {
    %c0_i32 = arith.constant 0 : i32
    %c0_i32_0 = arith.constant 0 : i32
    %c0_i32_1 = arith.constant 0 : i32
    return %c0_i32, %c0_i32_0 : i32, i32
  }
  func.func @transform_5(%arg0: i32) -> (i32, i32) {
    %c0_i32 = arith.constant 0 : i32
    %c0_i32_0 = arith.constant 0 : i32
    %c0_i32_1 = arith.constant 0 : i32
    return %c0_i32, %c0_i32_0 : i32, i32
  }
  func.func @transform_6(%arg0: i32) -> i32 {
    %c0_i32 = arith.constant 0 : i32
    %c0_i32_0 = arith.constant 0 : i32
    return %c0_i32 : i32
  }
  func.func @transform_7(%arg0: i32) -> (i32, i32) {
    %c0_i32 = arith.constant 0 : i32
    %c0_i32_0 = arith.constant 0 : i32
    return %c0_i32, %arg0 : i32, i32
  }
}

</mosaic_0001>

<bundles_post_ra>
// kernel: tpu_custom_call.1
= control target key start
LH: loop header
LB: loop body
LE: loop exit
PB: predicated region body
PF: predicated region fallthrough
CT: control target
= control target key end

     0   :  { %vm68_vm0 = vcmask 261120   ;;  %s1190_s0 = inlined_call_operand.vmem [shape: f32[128,32], index: 0, kind: input, shape index: {}]   ;;  %s1191_s1 = inlined_call_operand.vmem [shape: f32[128,32], index: 1, kind: input, shape index: {}]   ;;  %s1192_s2 = inlined_call_operand.vmem [shape: f32[32,32], index: 2, kind: input, shape index: {}]   ;;  %s1193_s3 = inlined_call_operand.vmem [shape: f32[32,32], index: 3, kind: input, shape index: {}]   ;;  %s1194_s4 = inlined_call_operand.vmem [shape: f32[1,32], index: 4, kind: input, shape index: {}]   ;;  %s1195_s5 = inlined_call_operand.vmem [shape: f32[1,32], index: 5, kind: input, shape index: {}]   ;;  %s1196_s6 = inlined_call_operand.<no memory space> [shape: f32[1], index: 6, kind: input, shape index: {}]   ;;  %s1197_s7 = inlined_call_operand.hbm [shape: f32[1,128], index: 7, kind: output, shape index: {}]  }
   0x1   :  { %v64_v0 = vld [vmem:[%s1193_s3] sm:$0xff]  ;;  %v65_v1 = vld [vmem:[%s1193_s3 + $0x8] sm:$0xff]  ;;  %v66_v2 = vld [vmem:[%s1193_s3 + $0x10] sm:$0xff] }
   0x2   :  { %v846_v3 = vpack.c.bf16 %v65_v1, %v64_v0  ;;  %v67_v4 = vld [vmem:[%s1193_s3 + $0x18] sm:$0xff]  ;;  %v48_v5 = vld [vmem:[%s1191_s1] sm:$0xff]  ;;  %v45_v8 = vld [vmem:[%s1192_s2 + $0x8] sm:$0xff] }
   0x3   :  { %v850_v6 = vpack.c.bf16 %v67_v4, %v66_v2  ;;  %755 = vmatprep.mubr.msk.f32.mxu0 %vm68_vm0, %v48_v5  ;;  %v44_v7 = vld [vmem:[%s1192_s2] sm:$0xff]  ;;  %v46_v10 = vld [vmem:[%s1192_s2 + $0x10] sm:$0xff]  ;;  %v47_v11 = vld [vmem:[%s1192_s2 + $0x18] sm:$0xff] }
   0x4   :  { %847 = vmatprep.subr.bf16.mxu0 %v846_v3  ;;  %v854_v9 = vpack.c.bf16 %v45_v8, %v44_v7  ;;  %v49_v12 = vld [vmem:[%s1191_s1 + $0x8] sm:$0xff]  ;;  %v50_v13 = vld [vmem:[%s1191_s1 + $0x10] sm:$0xff]  ;;  %v858_v14 = vpack.c.bf16 %v47_v11, %v46_v10  ;;  %v51_v15 = vld [vmem:[%s1191_s1 + $0x18] sm:$0xff] }
   0x5   :  { %849 = vmatpush3.bf16.msra.mxu0 %v846_v3  ;;  %v52_v16 = vld [vmem:[%s1191_s1 + $0x20] sm:$0xff] }
   0x6   :  { %851 = vmatprep.subr.bf16.mxu0 %v850_v6 }
   0x9   :  { %853 = vmatpush3.bf16.msra.mxu0 %v850_v6 }
   0xa   :  { %855 = vmatprep.subr.bf16.mxu0 %v854_v9 }
   0xc   :  { %756 = vmatmul.mubr.msk.f32.vlgmr.msra.gmra.mrb[0].mxu0 %vm68_vm0, %v49_v12 }
   0xd   :  { %857 = vmatpush3.bf16.msra.mxu0 %v854_v9  ;;  %758 = vmatprep.mubr.msk.f32.mxu0 %vm68_vm0, %v50_v13 }
   0xe   :  { %859 = vmatprep.subr.bf16.mxu0 %v858_v14 }
   0xf   :  { %13 = vsyncpa [#allocation4], 0  ;;  %v53_v17 = vld [vmem:[%s1191_s1 + $0x28] sm:$0xff]  ;;  %v54_v18 = vld [vmem:[%s1191_s1 + $0x30] sm:$0xff]  ;;  %v942_v44 = vmov 0.0|0.0   ;;  %vm943_vm1 = vmmov 0  }
  0x10   :  { %759 = vmatmul.mubr.msk.f32.gmra.mrb[2].mxu0 %vm68_vm0, %v51_v15  ;;  %v55_v19 = vld [vmem:[%s1191_s1 + $0x38] sm:$0xff]  ;;  %v56_v20 = vld [vmem:[%s1191_s1 + $0x40] sm:$0xff]  ;;  %v57_v21 = vld [vmem:[%s1191_s1 + $0x48] sm:$0xff]  ;;  %862 = vmatprep.subr.bf16.mxu1 %v942_v44  ;;  %v944_v45 = vmov 0.0   ;;  %s945_s8 = smov [#allocation3]  }
  0x11   :  { %761 = vmatprep.mubr.msk.f32.mxu0 %vm68_vm0, %v52_v16  ;;  %861 = vmatpush3.bf16.msra.mxu0 %v858_v14  ;;  %v58_v22 = vld [vmem:[%s1191_s1 + $0x50] sm:$0xff]  ;;  %v59_v23 = vld [vmem:[%s1191_s1 + $0x58] sm:$0xff]  ;;  %v60_v24 = vld [vmem:[%s1191_s1 + $0x60] sm:$0xff]  ;;  %s631_s9 = sshll.u32 %s945_s8, 4  ;;  %s632_s9 = int_to_ptr.vmem [resolvable:$true] %s631_s9 }
  0x12   :  { %v61_v25 = vld [vmem:[%s1191_s1 + $0x68] sm:$0xff]  ;;  %v62_v26 = vld [vmem:[%s1191_s1 + $0x70] sm:$0xff]  ;;  %v63_v27 = vld [vmem:[%s1191_s1 + $0x78] sm:$0xff]  ;;  %843 = vmatprep.mubr.msk.f32.mxu1 %vm943_vm1, %v944_v45  ;;  %s922_s10 = scalar_lea.vmem %s632_s9, 32  ;;  %p923_p1 = scmp.lt.s32.totalorder %s632_s9, %s632_s9 }
  0x13   :  { %v28_v28 = vld [vmem:[%s1190_s0] sm:$0xff]  ;;  %v29_v29 = vld [vmem:[%s1190_s0 + $0x8] sm:$0xff]  ;;  %v30_v30 = vld [vmem:[%s1190_s0 + $0x10] sm:$0xff] }
  0x14   :  { %762 = vmatmul.mubr.msk.f32.gmra.mrb[4].mxu0 %vm68_vm0, %v53_v17  ;;  %v31_v31 = vld [vmem:[%s1190_s0 + $0x18] sm:$0xff]  ;;  %v32_v32 = vld [vmem:[%s1190_s0 + $0x20] sm:$0xff]  ;;  %v33_v33 = vld [vmem:[%s1190_s0 + $0x28] sm:$0xff] }
  0x15   :  { %764 = vmatprep.mubr.msk.f32.mxu0 %vm68_vm0, %v54_v18  ;;  %v34_v34 = vld [vmem:[%s1190_s0 + $0x30] sm:$0xff]  ;;  %v35_v35 = vld [vmem:[%s1190_s0 + $0x38] sm:$0xff]  ;;  %v36_v36 = vld [vmem:[%s1190_s0 + $0x40] sm:$0xff] }
  0x16   :  { %v37_v37 = vld [vmem:[%s1190_s0 + $0x48] sm:$0xff]  ;;  %v38_v38 = vld [vmem:[%s1190_s0 + $0x50] sm:$0xff]  ;;  %v39_v39 = vld [vmem:[%s1190_s0 + $0x58] sm:$0xff] }
  0x17   :  { %v40_v40 = vld [vmem:[%s1190_s0 + $0x60] sm:$0xff]  ;;  %v41_v41 = vld [vmem:[%s1190_s0 + $0x68] sm:$0xff]  ;;  %v42_v42 = vld [vmem:[%s1190_s0 + $0x70] sm:$0xff] }
  0x18   :  { %765 = vmatmul.mubr.msk.f32.gmra.mrb[6].mxu0 %vm68_vm0, %v55_v19  ;;  %v43_v43 = vld [vmem:[%s1190_s0 + $0x78] sm:$0xff]  ;;  %v671_v46 = vld [vmem:[%s1194_s4] ss:$0 sm:$0xff]  ;;  %vm1144_vm2 = vmpackc.low %vm68_vm0, %vm68_vm0 }
  0x19   :  { %767 = vmatprep.mubr.msk.f32.mxu0 %vm68_vm0, %v56_v20 }
  0x1c   :  { %768 = vmatmul.mubr.msk.f32.gmra.mrb[8].mxu0 %vm68_vm0, %v57_v21 }
  0x1d   :  { %770 = vmatprep.mubr.msk.f32.mxu0 %vm68_vm0, %v58_v22 }
  0x20   :  { %771 = vmatmul.mubr.msk.f32.gmra.mrb[10].mxu0 %vm68_vm0, %v59_v23 }
  0x21   :  { %773 = vmatprep.mubr.msk.f32.mxu0 %vm68_vm0, %v60_v24 }
  0x24   :  { %774 = vmatmul.mubr.msk.f32.gmra.mrb[12].mxu0 %vm68_vm0, %v61_v25 }
  0x25   :  { %776 = vmatprep.mubr.msk.f32.mxu0 %vm68_vm0, %v62_v26 }
  0x28   :  { %777 = vmatmul.mubr.msk.f32.gmra.mrb[14].mxu0 %vm68_vm0, %v63_v27 }
  0x29   :  { %787 = vmatprep.mubr.msk.f32.mxu0 %vm68_vm0, %v28_v28 }
  0x2c   :  { %788 = vmatmul.mubr.msk.f32.vlgmr.msra.gmra.mrb[0].mxu0 %vm68_vm0, %v29_v29 }
  0x2d   :  { %790 = vmatprep.mubr.msk.f32.mxu0 %vm68_vm0, %v30_v30 }
  0x30   :  { %791 = vmatmul.mubr.msk.f32.gmra.mrb[2].mxu0 %vm68_vm0, %v31_v31 }
  0x31   :  { %793 = vmatprep.mubr.msk.f32.mxu0 %vm68_vm0, %v32_v32 }
  0x34   :  { %794 = vmatmul.mubr.msk.f32.gmra.mrb[4].mxu0 %vm68_vm0, %v33_v33 }
  0x35   :  { %796 = vmatprep.mubr.msk.f32.mxu0 %vm68_vm0, %v34_v34 }
  0x38   :  { %797 = vmatmul.mubr.msk.f32.gmra.mrb[6].mxu0 %vm68_vm0, %v35_v35 }
  0x39   :  { %799 = vmatprep.mubr.msk.f32.mxu0 %vm68_vm0, %v36_v36 }
  0x3c   :  { %800 = vmatmul.mubr.msk.f32.gmra.mrb[8].mxu0 %vm68_vm0, %v37_v37 }
  0x3d   :  { %802 = vmatprep.mubr.msk.f32.mxu0 %vm68_vm0, %v38_v38 }
  0x40   :  { %803 = vmatmul.mubr.msk.f32.gmra.mrb[10].mxu0 %vm68_vm0, %v39_v39 }
  0x41   :  { %805 = vmatprep.mubr.msk.f32.mxu0 %vm68_vm0, %v40_v40  ;;  %v494_v40 = vld [vmem:[%s1195_s5] sm:$0x1]  ;;  %s918_s5 = scalar_lea.vmem %s632_s9, 16 }
  0x42   :  { %p919_p0 = scmp.ne.s32.totalorder %s632_s9, %s918_s5  ;;  %p924_p2 = scmp.lt.s32.totalorder %s922_s10, %s918_s5 }
  0x44   :  { %806 = vmatmul.mubr.msk.f32.gmra.mrb[12].mxu0 %vm68_vm0, %v41_v41  ;;  %v496_v41 = vstv %s1196_s6  ;;  %p925_p3 = por %p924_p2, %p923_p1 }
  0x45   :  { %808 = vmatprep.mubr.msk.f32.mxu0 %vm68_vm0, %v42_v42 }
  0x46   :  { %p926_p4 = pnand %p925_p3, %p919_p0 }
  0x48   :  { %809 = vmatmul.mubr.msk.f32.gmra.mrb[14].mxu0 %vm68_vm0, %v43_v43 }
  0xff   :  { %v789_v47 = vpop.f32.mrb[0].mxu0 }
 0x100   :  { %v463_v48 = vadd.f32 %v789_v47, %v671_v46  ;;  %v376_v49 = vpop.f32.mrb[1].mxu0 }
 0x101   :  { %v462_v50 = vadd.f32 %v671_v46, %v376_v49 }
 0x102   :  { %v479_v51 = vmax.f32 %v463_v48, 0.0 }
 0x103   :  { %v478_v52 = vmax.f32 %v462_v50, 0.0  ;;  %v792_v53 = vpop.f32.mrb[2].mxu0 }
 0x104   :  { %v465_v54 = vadd.f32 %v792_v53, %v671_v46  ;;  %v386_v55 = vpop.f32.mrb[3].mxu0 }
 0x105   :  { %v863_v57 = vpack.c.bf16 %v479_v51, %v478_v52  ;;  %v464_v58 = vadd.f32 %v671_v46, %v386_v55 }
 0x106   :  { %v481_v59 = vmax.f32 %v465_v54, 0.0 }
 0x107   :  { %v480_v60 = vmax.f32 %v464_v58, 0.0  ;;  %v795_v61 = vpop.f32.mrb[4].mxu0  ;;  %865 = vmatpush3.bf16.xpose.msk.msra.mxu1 %vm1144_vm2, %v863_v57 }
 0x108   :  { %v467_v62 = vadd.f32 %v795_v61, %v671_v46  ;;  %v396_v63 = vpop.f32.mrb[5].mxu0  ;;  %866 = vmatprep.subr.bf16.mxu1 %v942_v44 }
 0x109   :  { %v867_v0 = vpack.c.bf16 %v481_v59, %v480_v60  ;;  %v466_v1 = vadd.f32 %v671_v46, %v396_v63 }
 0x10a   :  { %v483_v2 = vmax.f32 %v467_v62, 0.0 }
 0x10b   :  { %v482_v3 = vmax.f32 %v466_v1, 0.0  ;;  %v798_v4 = vpop.f32.mrb[6].mxu0 }
 0x10c   :  { %v469_v5 = vadd.f32 %v798_v4, %v671_v46  ;;  %v406_v6 = vpop.f32.mrb[7].mxu0 }
 0x10d   :  { %v871_v7 = vpack.c.bf16 %v483_v2, %v482_v3  ;;  %v468_v8 = vadd.f32 %v671_v46, %v406_v6 }
 0x10e   :  { %v485_v9 = vmax.f32 %v469_v5, 0.0 }
 0x10f   :  { %v484_v10 = vmax.f32 %v468_v8, 0.0  ;;  %v801_v11 = vpop.f32.mrb[8].mxu0  ;;  %869 = vmatpush3.bf16.xpose.msk.msra.mxu1 %vm1144_vm2, %v867_v0 }
 0x110   :  { %v471_v12 = vadd.f32 %v801_v11, %v671_v46  ;;  %v416_v13 = vpop.f32.mrb[9].mxu0  ;;  %870 = vmatprep.subr.bf16.mxu1 %v942_v44 }
 0x111   :  { %v875_v14 = vpack.c.bf16 %v485_v9, %v484_v10  ;;  %v470_v15 = vadd.f32 %v671_v46, %v416_v13 }
 0x112   :  { %v487_v16 = vmax.f32 %v471_v12, 0.0 }
 0x113   :  { %v486_v17 = vmax.f32 %v470_v15, 0.0  ;;  %v804_v18 = vpop.f32.mrb[10].mxu0 }
 0x114   :  { %v473_v19 = vadd.f32 %v804_v18, %v671_v46  ;;  %v426_v20 = vpop.f32.mrb[11].mxu0 }
 0x115   :  { %v879_v21 = vpack.c.bf16 %v487_v16, %v486_v17  ;;  %v472_v22 = vadd.f32 %v671_v46, %v426_v20 }
 0x116   :  { %v489_v23 = vmax.f32 %v473_v19, 0.0 }
 0x117   :  { %v488_v24 = vmax.f32 %v472_v22, 0.0  ;;  %v807_v25 = vpop.f32.mrb[12].mxu0  ;;  %873 = vmatpush3.bf16.xpose.msk.msra.mxu1 %vm1144_vm2, %v871_v7 }
 0x118   :  { %v475_v26 = vadd.f32 %v807_v25, %v671_v46  ;;  %v436_v27 = vpop.f32.mrb[13].mxu0  ;;  %874 = vmatprep.subr.bf16.mxu1 %v942_v44 }
 0x119   :  { %v883_v28 = vpack.c.bf16 %v489_v23, %v488_v24  ;;  %v474_v29 = vadd.f32 %v671_v46, %v436_v27 }
 0x11a   :  { %v491_v30 = vmax.f32 %v475_v26, 0.0 }
 0x11b   :  { %v490_v31 = vmax.f32 %v474_v29, 0.0  ;;  %v810_v32 = vpop.f32.mrb[14].mxu0 }
 0x11c   :  { %v477_v33 = vadd.f32 %v810_v32, %v671_v46  ;;  %v446_v34 = vpop.f32.mrb[15].mxu0 }
 0x11d   :  { %v887_v35 = vpack.c.bf16 %v491_v30, %v490_v31  ;;  %v476_v36 = vadd.f32 %v671_v46, %v446_v34 }
 0x11e   :  { %v493_v37 = vmax.f32 %v477_v33, 0.0 }
 0x11f   :  { %v492_v38 = vmax.f32 %v476_v36, 0.0  ;;  %877 = vmatpush3.bf16.xpose.msk.msra.mxu1 %vm1144_vm2, %v875_v14 }
 0x120   :  { %878 = vmatprep.subr.bf16.mxu1 %v942_v44 }
 0x121   :  { %v891_v39 = vpack.c.bf16 %v493_v37, %v492_v38 }
 0x127   :  { %881 = vmatpush3.bf16.xpose.msk.msra.mxu1 %vm1144_vm2, %v879_v21 }
 0x128   :  { %882 = vmatprep.subr.bf16.mxu1 %v942_v44 }
 0x12f   :  { %885 = vmatpush3.bf16.xpose.msk.msra.mxu1 %vm1144_vm2, %v883_v28 }
 0x130   :  { %886 = vmatprep.subr.bf16.mxu1 %v942_v44 }
 0x137   :  { %889 = vmatpush3.bf16.xpose.msk.msra.mxu1 %vm1144_vm2, %v887_v35 }
 0x138   :  { %890 = vmatprep.subr.bf16.mxu1 %v942_v44 }
 0x13f   :  { %893 = vmatpush3.bf16.xpose.msk.msra.mxu1 %vm1144_vm2, %v891_v39 }
 0x146   :  { %844 = vmatmul.mubr.msk.f32.vlgmr.msra.gmra.mrb[0].mxu1 %vm68_vm0, %v494_v40 }
 0x219   :  { %v614_v42 = vpop.f32.mrb[0].mxu1 }
 0x21a   :  { %v615_v43 = vadd.f32 %v614_v42, %v496_v41  ;;  %v845_v45 = vpop.f32.mrb[1].mxu1 }
 0x21c   :  { %v689_v46 = vmul.f32 -1.442695, %v615_v43 }
 0x21e   :  { %914 = vpow2.f32 %v689_v46 }
 0x228   :  { %v915_v47 = vpop.eup %914 }
 0x229   :  { %v621_v44 = vadd.f32 1.0, %v915_v47 }
 0x22b   :  { %916 = vrcp.f32 %v621_v44 }
 0x235   :  { %v917_v48 = vpop.eup %916 }
 0x236   :  { %624 = vst [vmem:[#allocation3] sm:$0x1] %v917_v48 }
 0x237   :  { %929 = shalt.err (!%p926_p4)
}
 0x238   :  { %s930_s12 = scalar_lea.hbm %s1197_s7, 16 }
 0x239   :  { %p931_p5 = scmp.ne.s32.totalorder %s1197_s7, %s930_s12  ;;  %p934_p6 = scmp.lt.u32.totalorder %s930_s12, %s1197_s7 }
 0x23b   :  { %p936_p7 = pnand %p934_p6, %p931_p5 }
 0x23d   :  { %939 = shalt.err (!%p936_p7)
}
 0x23e   :  { %634 = dma.vmem_to_hbm [thread:$0]  %s632_s9, 16, %s1197_s7, [#allocation4]  }
 0x23f   :  { %940 = dma.done.wait [#allocation4], 16  }
 0x240   :  { %941 = vsyncadd [#allocation4], 4294967280 }
 0x241   :  { %638 = vsyncpa [#allocation4], 1 }

</bundles_post_ra>
